<compile_context>
chip_gen: v6e
topology: v6e:2x2x1
jax: 0.10.0
libtpu: 0.0.40
codegen_flags: <defaults>
</compile_context>

<pallas_src>
import math
import numpy as np
import jax
import jax.numpy as jnp
from jax import lax
from jax.experimental import pallas as pl
from jax.experimental.pallas import tpu as pltpu

# --- model hyperparameters (opt) ---
HIDDEN = 32              # opt.hidden_size
FF = 64                  # opt.ff_size
NHEAD = 4                # opt.multi_head
DHEAD = HIDDEN // NHEAD  # opt.hidden_size_head
EPS = 1e-6               # MCAN LayerNorm eps
MAX_BLOCK_BATCH = 32     # bound on the statically unrolled per-step batch loop


def _pack_params(params):
    """Pack the 16 tiny parameter arrays into 3 slabs (fewer kernel inputs).

    The attention scale 1/sqrt(DHEAD) is folded into Wq / bq here (free,
    constant folding at pack time).  Weight slabs are cast to bfloat16 (the
    MXU-native precision on v5e/v6e/v7x); the bias/gain slab stays float32.
    """
    (wq, bq, wk, bk, wv, bv, wm, bm,
     w1, b1, w2, b2, g1, be1, g2, be2) = params
    H = HIDDEN
    scale = 1.0 / math.sqrt(DHEAD)
    wq = wq * scale
    bq = bq * scale

    # All weights with H rows, lane-concatenated: [Wq|Wk|Wv | Wm | W1]
    w_slab = jnp.concatenate([wq, wk, wv, wm, w1], axis=1).astype(jnp.bfloat16)
    w2_bf = w2.astype(jnp.bfloat16)

    # All 1-row bias/gain/beta vectors in one (8, 3H) f32 slab (zero-padded lanes).
    VW = 3 * H

    def row(v):
        v = v.reshape(1, -1).astype(jnp.float32)
        return jnp.pad(v, ((0, 0), (0, VW - v.shape[1])))

    vec_slab = jnp.concatenate([
        row(jnp.concatenate([bq, bk, bv], axis=1)),   # 0: fused qkv bias (3H)
        row(bm),                                      # 1: merge bias
        row(b1),                                      # 2: FFN bias 1 (FF)
        row(b2),                                      # 3: FFN bias 2
        row(g1),                                      # 4: norm1 gain
        row(be1),                                     # 5: norm1 beta
        row(g2),                                      # 6: norm2 gain
        row(be2),                                     # 7: norm2 beta
    ], axis=0)                                        # (8, 3H)
    return w_slab, w2_bf, vec_slab


def _pick_block_batch(B):
    """Largest batch block <= 8 dividing B that still gives >= 2 grid steps."""
    for cand in (8, 4, 2, 1):
        if B % cand == 0 and B // cand >= 2:
            return cand
    return B   # B == 1: a single grid step is unavoidable


def _padded_bytes(rows, cols, itemsize):
    """Rough VMEM footprint with (sublane, 128-lane) tile padding."""
    sub = 8 if itemsize == 4 else 16
    prow = -(-rows // sub) * sub
    pcol = -(-cols // 128) * 128
    return prow * pcol * itemsize


def sa_forward(x, x_mask, params, block_batch=None):
    B, S, H = x.shape
    assert H == HIDDEN
    BB = _pick_block_batch(B) if block_batch is None else block_batch
    assert B % BB == 0, "batch must be divisible by the batch block"
    assert BB <= MAX_BLOCK_BATCH, "cap BB to bound the unrolled attention loop"
    R = BB * S                      # rows processed per grid step
    # (8,128) block rule: the row block must be a multiple of 8 or full extent.
    assert R % 8 == 0 or BB == B, "BB*S must be a multiple of 8"
    assert S % 2 == 0, "even S keeps bf16 qkv-scratch row slices pack-aligned"
    n_steps = B // BB

    w_slab, w2_bf, vec_slab = _pack_params(params)
    # Additive key-padding bias computed once in the wrapper (hoists the
    # compare/select out of the per-head loop entirely).
    mask_bias = x_mask.astype(jnp.float32) * jnp.float32(-1e9)    # (B, 1, S)

    def kernel(x_ref, mask_ref, ws_ref, w2_ref, vec_ref, out_ref,
               qkv_ref, att_ref):
        x_blk = x_ref[...]                        # (R, H) f32: BB batch elems

        # --- packed parameters (constant index_map -> resident across steps) ---
        wqkv = ws_ref[:, 0:3 * H]                 # (H, 3H) bf16
        wm = ws_ref[:, 3 * H:4 * H]               # (H, H)  bf16
        w1 = ws_ref[:, 4 * H:4 * H + FF]          # (H, FF) bf16
        w2v = w2_ref[...]                         # (FF, H) bf16
        bqkv = vec_ref[0:1, 0:3 * H]
        bm = vec_ref[1:2, 0:H]
        b1 = vec_ref[2:3, 0:FF]
        b2 = vec_ref[3:4, 0:H]
        g1 = vec_ref[4:5, 0:H]
        be1 = vec_ref[5:6, 0:H]
        g2 = vec_ref[6:7, 0:H]
        be2 = vec_ref[7:8, 0:H]

        # --- fused q/k/v projection: one (R,H)x(H,3H) bf16 MXU matmul ---
        qkv = jnp.dot(x_blk.astype(jnp.bfloat16), wqkv,
                      preferred_element_type=jnp.float32) + bqkv
        # Stage in VMEM so per-head q/k/v become cheap lane-offset ref loads
        # instead of 8-lane extracts from a live 96-lane value.
        qkv_ref[...] = qkv.astype(jnp.bfloat16)

        # --- multi-head attention ---
        # BB*NHEAD tiny (S,S) problems, statically unrolled (BB is capped in
        # the wrapper).  Head outputs go straight into lane-offset slices of
        # the att_ref scratch; a single merge matmul follows.
        for b in range(BB):
            r0 = b * S
            bias_b = jnp.broadcast_to(mask_ref[b], (S, S))  # hoisted per batch elem
            for h in range(NHEAD):
                q_h = qkv_ref[r0:r0 + S, h * DHEAD:(h + 1) * DHEAD]
                k_h = qkv_ref[r0:r0 + S, H + h * DHEAD:H + (h + 1) * DHEAD]
                v_h = qkv_ref[r0:r0 + S, 2 * H + h * DHEAD:2 * H + (h + 1) * DHEAD]
                # 1/sqrt(d) already folded into Wq; mask already an additive bias.
                s = jnp.dot(q_h, k_h.T, preferred_element_type=jnp.float32) + bias_b
                s = s - jnp.max(s, axis=-1, keepdims=True)
                e = jnp.exp(s)
                inv = pl.reciprocal(jnp.sum(e, axis=-1, keepdims=True), approx=True)
                att = (e * inv).astype(jnp.bfloat16)
                att_ref[r0:r0 + S, h * DHEAD:(h + 1) * DHEAD] = jnp.dot(
                    att, v_h, preferred_element_type=jnp.float32)

        atted = jnp.dot(att_ref[...].astype(jnp.bfloat16), wm,
                        preferred_element_type=jnp.float32) + bm

        # MCAN LayerNorm: a*(x-mean)/(std+eps)+b, unbiased std.  The divide
        # goes to the EUP via the approximate reciprocal (VALU relief).
        def layer_norm(val, gamma, beta):
            n = val.shape[-1]
            mu = jnp.sum(val, axis=-1, keepdims=True) * (1.0 / n)
            d = val - mu
            var = jnp.sum(d * d, axis=-1, keepdims=True) * (1.0 / (n - 1))
            inv_std = pl.reciprocal(jnp.sqrt(var) + EPS, approx=True)
            return gamma * (d * inv_std) + beta

        x1 = layer_norm(x_blk + atted, g1, be1)           # norm1(x + mhatt(x))

        h1 = jnp.maximum(
            jnp.dot(x1.astype(jnp.bfloat16), w1,
                    preferred_element_type=jnp.float32) + b1, 0.0)
        ffn = jnp.dot(h1.astype(jnp.bfloat16), w2v,
                      preferred_element_type=jnp.float32) + b2

        out_ref[...] = layer_norm(x1 + ffn, g2, be2)      # norm2(x1 + ffn(x1))

    x_rows = x.reshape(B * S, H)      # flatten batch*seq rows in the wrapper

    # --- cost estimate (helps XLA overlap neighbors of the custom call) ---
    flops = int(2 * B * S * H * (3 * H)     # qkv projection
                + 4 * B * S * S * H         # scores + att@v over all heads
                + 2 * B * S * H * H         # merge
                + 4 * B * S * H * FF)       # FFN (two matmuls)
    transcendentals = int(B * NHEAD * S * S + B * NHEAD * S + 2 * B * S)
    bytes_accessed = int(4 * B * S * H * 2 + 4 * B * S
                         + 2 * w_slab.size + 2 * w2_bf.size + 4 * vec_slab.size)
    cost = pl.CostEstimate(flops=flops, transcendentals=transcendentals,
                           bytes_accessed=bytes_accessed)

    # --- explicit VMEM budget: raise v5e's 16 MiB scoped default, but keep
    # headroom under v7x's 64 MiB physical capacity. ---
    vmem_needed = (2 * _padded_bytes(R, H, 4)                    # x (2 bufs)
                   + 2 * _padded_bytes(R, H, 4)                  # out (2 bufs)
                   + 2 * BB * _padded_bytes(1, S, 4)             # mask bias
                   + _padded_bytes(R, 3 * H, 2)                  # qkv scratch
                   + _padded_bytes(R, H, 4)                      # att scratch
                   + 2 * (_padded_bytes(*w_slab.shape, 2)
                          + _padded_bytes(*w2_bf.shape, 2)
                          + _padded_bytes(*vec_slab.shape, 4)))
    vmem_limit = int(min(48 * 1024 * 1024,
                         max(32 * 1024 * 1024, 4 * vmem_needed)))

    out = pl.pallas_call(
        kernel,
        out_shape=jax.ShapeDtypeStruct((B * S, H), jnp.float32),
        grid_spec=pltpu.PrefetchScalarGridSpec(
            num_scalar_prefetch=0,
            grid=(n_steps,),
            in_specs=[
                pl.BlockSpec((R, H), lambda i: (i, 0)),            # x rows
                pl.BlockSpec((BB, 1, S), lambda i: (i, 0, 0)),     # mask bias
                pl.BlockSpec(w_slab.shape, lambda i: (0, 0)),      # weight slab
                pl.BlockSpec(w2_bf.shape, lambda i: (0, 0)),       # FFN w2
                pl.BlockSpec(vec_slab.shape, lambda i: (0, 0)),    # bias/gain slab
            ],
            out_specs=pl.BlockSpec((R, H), lambda i: (i, 0)),
            scratch_shapes=[
                pltpu.VMEM((R, 3 * H), jnp.bfloat16),              # staged qkv
                pltpu.VMEM((R, H), jnp.float32),                   # head outputs
            ],
        ),
        compiler_params=pltpu.CompilerParams(
            dimension_semantics=("parallel",),
            vmem_limit_bytes=vmem_limit),
        cost_estimate=cost,
    )(x_rows, mask_bias, w_slab, w2_bf, vec_slab)

    return out.reshape(B, S, H)


def make_params(key):
    ks = jax.random.split(key, 8)

    def w(k, shape, scale=0.05):
        return (scale * jax.random.normal(k, shape)).astype(jnp.float32)

    wq = w(ks[0], (HIDDEN, HIDDEN)); bq = jnp.zeros((1, HIDDEN), jnp.float32)
    wk = w(ks[1], (HIDDEN, HIDDEN)); bk = jnp.zeros((1, HIDDEN), jnp.float32)
    wv = w(ks[2], (HIDDEN, HIDDEN)); bv = jnp.zeros((1, HIDDEN), jnp.float32)
    wm = w(ks[3], (HIDDEN, HIDDEN)); bm = jnp.zeros((1, HIDDEN), jnp.float32)
    w1 = w(ks[4], (HIDDEN, FF));     b1 = jnp.zeros((1, FF), jnp.float32)
    w2 = w(ks[5], (FF, HIDDEN));     b2 = jnp.zeros((1, HIDDEN), jnp.float32)
    g1 = jnp.ones((1, HIDDEN), jnp.float32); be1 = jnp.zeros((1, HIDDEN), jnp.float32)
    g2 = jnp.ones((1, HIDDEN), jnp.float32); be2 = jnp.zeros((1, HIDDEN), jnp.float32)
    return (wq, bq, wk, bk, wv, bv, wm, bm, w1, b1, w2, b2, g1, be1, g2, be2)


def sa_reference(x, x_mask, params):
    """Pure-JAX f32 reference (same math as the PyTorch module in eval mode)."""
    wq, bq, wk, bk, wv, bv, wm, bm, w1, b1, w2, b2, g1, be1, g2, be2 = params
    B, S, H = x.shape

    def lin(v, w, b):
        return v @ w + b

    def split_heads(v):  # (B,S,H) -> (B,nh,S,dh)
        return v.reshape(B, S, NHEAD, DHEAD).transpose(0, 2, 1, 3)

    q = split_heads(lin(x, wq, bq))
    k = split_heads(lin(x, wk, bk))
    v = split_heads(lin(x, wv, bv))
    scores = jnp.einsum("bhqd,bhkd->bhqk", q, k) / math.sqrt(DHEAD)
    mask4 = x_mask[:, None, :, :] > 0.5            # (B,1,1,S)
    scores = jnp.where(mask4, -1e9, scores)
    att = jax.nn.softmax(scores, axis=-1)
    atted = jnp.einsum("bhqk,bhkd->bhqd", att, v).transpose(0, 2, 1, 3).reshape(B, S, H)
    atted = lin(atted, wm, bm)

    def ln(val, g, b):
        mu = jnp.mean(val, axis=-1, keepdims=True)
        std = jnp.sqrt(jnp.sum((val - mu) ** 2, axis=-1, keepdims=True) / (val.shape[-1] - 1))
        return g * (val - mu) / (std + EPS) + b

    x1 = ln(x + atted, g1, be1)
    ffn = lin(jnp.maximum(lin(x1, w1, b1), 0.0), w2, b2)
    return ln(x1 + ffn, g2, be2)


if __name__ == "__main__":
    key = jax.random.PRNGKey(0)
    k_x, k_p = jax.random.split(key)

    B, S = 2, 8
    x = jax.random.normal(k_x, (B, S, HIDDEN), dtype=jnp.float32)
    # mask the last two key positions of every sequence
    x_mask = jnp.zeros((B, 1, S), jnp.float32).at[:, :, -2:].set(1.0)

    params = make_params(k_p)

    out = sa_forward(x, x_mask, params)     # default: BB=1 -> grid=(2,), pipelined
    out = jax.block_until_ready(out)

    ref = sa_reference(x, x_mask, params)
    # Tolerance is loose because the matmul operands are cast to bfloat16
    # (f32 MXU accumulation) and the softmax/LayerNorm denominators use the
    # EUP approximate reciprocal; the f32 reference is exact.
    np.testing.assert_allclose(np.asarray(out), np.asarray(ref), rtol=2e-2, atol=2e-2)

    print("KERNEL_OK")
</pallas_src>

<mosaic_0001>
module attributes {stable_mosaic.version = 11 : i64} {
  func.func @kernel(%arg0: i32, %arg1: memref<8x32xf32, #tpu.memory_space<vmem>>, %arg2: memref<1x1x8xf32, #tpu.memory_space<vmem>>, %arg3: memref<32x192xbf16, #tpu.memory_space<vmem>>, %arg4: memref<64x32xbf16, #tpu.memory_space<vmem>>, %arg5: memref<8x96xf32, #tpu.memory_space<vmem>>, %arg6: memref<8x32xf32, #tpu.memory_space<vmem>>, %arg7: memref<8x96xbf16, #tpu.memory_space<vmem>>, %arg8: memref<8x32xf32, #tpu.memory_space<vmem>>) attributes {dimension_semantics = [#tpu.dimension_semantics<parallel>], iteration_bounds = array<i64: 2>, scalar_prefetch = 0 : i64, scratch_operands = 2 : i64, tpu.core_type = #tpu.core_type<tc>, window_params = [{transform_indices = @transform_0, window_bounds = array<i64: 8, 32>}, {transform_indices = @transform_1, window_bounds = array<i64: 1, 1, 8>}, {pipeline_mode = #tpu.pipeline_mode<synchronous>, transform_indices = @transform_2, window_bounds = array<i64: 32, 192>}, {pipeline_mode = #tpu.pipeline_mode<synchronous>, transform_indices = @transform_3, window_bounds = array<i64: 64, 32>}, {pipeline_mode = #tpu.pipeline_mode<synchronous>, transform_indices = @transform_4, window_bounds = array<i64: 8, 96>}, {transform_indices = @transform_5, window_bounds = array<i64: 8, 32>}]} {
    %c0 = arith.constant 0 : index
    %c0_0 = arith.constant 0 : index
    %0 = vector.load %arg1[%c0, %c0_0] : memref<8x32xf32, #tpu.memory_space<vmem>>, vector<8x32xf32>
    %c0_1 = arith.constant 0 : index
    %c0_2 = arith.constant 0 : index
    %1 = vector.load %arg3[%c0_1, %c0_2] : memref<32x192xbf16, #tpu.memory_space<vmem>>, vector<32x96xbf16>
    %c0_3 = arith.constant 0 : index
    %c96 = arith.constant 96 : index
    %2 = vector.load %arg3[%c0_3, %c96] : memref<32x192xbf16, #tpu.memory_space<vmem>>, vector<32x32xbf16>
    %c0_4 = arith.constant 0 : index
    %c128 = arith.constant 128 : index
    %3 = vector.load %arg3[%c0_4, %c128] : memref<32x192xbf16, #tpu.memory_space<vmem>>, vector<32x64xbf16>
    %c0_5 = arith.constant 0 : index
    %c0_6 = arith.constant 0 : index
    %4 = vector.load %arg4[%c0_5, %c0_6] : memref<64x32xbf16, #tpu.memory_space<vmem>>, vector<64x32xbf16>
    %c0_7 = arith.constant 0 : index
    %c0_8 = arith.constant 0 : index
    %5 = vector.load %arg5[%c0_7, %c0_8] : memref<8x96xf32, #tpu.memory_space<vmem>>, vector<1x96xf32>
    %c1 = arith.constant 1 : index
    %c0_9 = arith.constant 0 : index
    %6 = vector.load %arg5[%c1, %c0_9] : memref<8x96xf32, #tpu.memory_space<vmem>>, vector<1x32xf32>
    %c2 = arith.constant 2 : index
    %c0_10 = arith.constant 0 : index
    %7 = vector.load %arg5[%c2, %c0_10] : memref<8x96xf32, #tpu.memory_space<vmem>>, vector<1x64xf32>
    %c3 = arith.constant 3 : index
    %c0_11 = arith.constant 0 : index
    %8 = vector.load %arg5[%c3, %c0_11] : memref<8x96xf32, #tpu.memory_space<vmem>>, vector<1x32xf32>
    %c4 = arith.constant 4 : index
    %c0_12 = arith.constant 0 : index
    %9 = vector.load %arg5[%c4, %c0_12] : memref<8x96xf32, #tpu.memory_space<vmem>>, vector<1x32xf32>
    %c5 = arith.constant 5 : index
    %c0_13 = arith.constant 0 : index
    %10 = vector.load %arg5[%c5, %c0_13] : memref<8x96xf32, #tpu.memory_space<vmem>>, vector<1x32xf32>
    %c6 = arith.constant 6 : index
    %c0_14 = arith.constant 0 : index
    %11 = vector.load %arg5[%c6, %c0_14] : memref<8x96xf32, #tpu.memory_space<vmem>>, vector<1x32xf32>
    %c7 = arith.constant 7 : index
    %c0_15 = arith.constant 0 : index
    %12 = vector.load %arg5[%c7, %c0_15] : memref<8x96xf32, #tpu.memory_space<vmem>>, vector<1x32xf32>
    %13 = arith.truncf %0 : vector<8x32xf32> to vector<8x32xbf16>
    %cst = arith.constant dense<0.000000e+00> : vector<8x96xf32>
    %14 = tpu.matmul %13, %1, %cst {dimension_numbers = #tpu.dot_dimension_numbers<[1], [0], [0], [1], [0, 0, 1, 1], [], []>} : vector<8x32xbf16>, vector<32x96xbf16>, vector<8x96xf32> -> vector<8x96xf32>
    %15 = vector.broadcast %5 : vector<1x96xf32> to vector<8x96xf32>
    %16 = arith.addf %14, %15 : vector<8x96xf32>
    %17 = arith.truncf %16 : vector<8x96xf32> to vector<8x96xbf16>
    %c0_16 = arith.constant 0 : index
    %c0_17 = arith.constant 0 : index
    %18 = vector.load %arg7[%c0_16, %c0_17] : memref<8x96xbf16, #tpu.memory_space<vmem>>, vector<8x96xbf16>
    tpu.vector_store %arg7[%c0_16, %c0_17], %17 {strides = array<i32>} : memref<8x96xbf16, #tpu.memory_space<vmem>>, vector<8x96xbf16>,
    %c0_18 = arith.constant 0 : index
    %c0_19 = arith.constant 0 : index
    %c0_20 = arith.constant 0 : index
    %19 = vector.load %arg2[%c0_18, %c0_19, %c0_20] : memref<1x1x8xf32, #tpu.memory_space<vmem>>, vector<1x1x8xf32>
    %20 = vector.shape_cast %19 : vector<1x1x8xf32> to vector<1x8xf32>
    %21 = vector.shape_cast %20 : vector<1x8xf32> to vector<1x8xf32>
    %22 = vector.broadcast %21 : vector<1x8xf32> to vector<8x8xf32>
    %c0_21 = arith.constant 0 : index
    %c0_22 = arith.constant 0 : index
    %23 = vector.load %arg7[%c0_21, %c0_22] : memref<8x96xbf16, #tpu.memory_space<vmem>>, vector<8x8xbf16>
    %c0_23 = arith.constant 0 : index
    %c32 = arith.constant 32 : index
    %24 = vector.load %arg7[%c0_23, %c32] : memref<8x96xbf16, #tpu.memory_space<vmem>>, vector<8x8xbf16>
    %c0_24 = arith.constant 0 : index
    %c64 = arith.constant 64 : index
    %25 = vector.load %arg7[%c0_24, %c64] : memref<8x96xbf16, #tpu.memory_space<vmem>>, vector<8x8xbf16>
    %26 = tpu.transpose %24, [1, 0] : vector<8x8xbf16> -> vector<8x8xbf16>
    %cst_25 = arith.constant dense<0.000000e+00> : vector<8x8xf32>
    %27 = tpu.matmul %23, %26, %cst_25 {dimension_numbers = #tpu.dot_dimension_numbers<[1], [0], [0], [1], [0, 0, 1, 1], [], []>} : vector<8x8xbf16>, vector<8x8xbf16>, vector<8x8xf32> -> vector<8x8xf32>
    %28 = arith.addf %27, %22 : vector<8x8xf32>
    %cst_26 = arith.constant dense<0xFF800000> : vector<8xf32>
    %29 = vector.multi_reduction <maximumf>, %28, %cst_26 [1] : vector<8x8xf32> to vector<8xf32>
    %30 = vector.shape_cast %29 : vector<8xf32> to vector<8x1xf32>
    %31 = vector.broadcast %30 : vector<8x1xf32> to vector<8x8xf32>
    %32 = arith.subf %28, %31 : vector<8x8xf32>
    %33 = math.exp %32 : vector<8x8xf32>
    %cst_27 = arith.constant dense<0.000000e+00> : vector<8xf32>
    %34 = vector.multi_reduction <add>, %33, %cst_27 [1] : vector<8x8xf32> to vector<8xf32>
    %35 = vector.shape_cast %34 : vector<8xf32> to vector<8x1xf32>
    %36 = tpu.reciprocal %35 {approx = true} : vector<8x1xf32> -> vector<8x1xf32>
    %37 = vector.broadcast %36 : vector<8x1xf32> to vector<8x8xf32>
    %38 = arith.mulf %33, %37 : vector<8x8xf32>
    %39 = arith.truncf %38 : vector<8x8xf32> to vector<8x8xbf16>
    %cst_28 = arith.constant dense<0.000000e+00> : vector<8x8xf32>
    %40 = tpu.matmul %39, %25, %cst_28 {dimension_numbers = #tpu.dot_dimension_numbers<[1], [0], [0], [1], [0, 0, 1, 1], [], []>} : vector<8x8xbf16>, vector<8x8xbf16>, vector<8x8xf32> -> vector<8x8xf32>
    %c0_29 = arith.constant 0 : index
    %c0_30 = arith.constant 0 : index
    %41 = vector.load %arg8[%c0_29, %c0_30] : memref<8x32xf32, #tpu.memory_space<vmem>>, vector<8x8xf32>
    tpu.vector_store %arg8[%c0_29, %c0_30], %40 {strides = array<i32>} : memref<8x32xf32, #tpu.memory_space<vmem>>, vector<8x8xf32>,
    %c0_31 = arith.constant 0 : index
    %c8 = arith.constant 8 : index
    %42 = vector.load %arg7[%c0_31, %c8] : memref<8x96xbf16, #tpu.memory_space<vmem>>, vector<8x8xbf16>
    %c0_32 = arith.constant 0 : index
    %c40 = arith.constant 40 : index
    %43 = vector.load %arg7[%c0_32, %c40] : memref<8x96xbf16, #tpu.memory_space<vmem>>, vector<8x8xbf16>
    %c0_33 = arith.constant 0 : index
    %c72 = arith.constant 72 : index
    %44 = vector.load %arg7[%c0_33, %c72] : memref<8x96xbf16, #tpu.memory_space<vmem>>, vector<8x8xbf16>
    %45 = tpu.transpose %43, [1, 0] : vector<8x8xbf16> -> vector<8x8xbf16>
    %cst_34 = arith.constant dense<0.000000e+00> : vector<8x8xf32>
    %46 = tpu.matmul %42, %45, %cst_34 {dimension_numbers = #tpu.dot_dimension_numbers<[1], [0], [0], [1], [0, 0, 1, 1], [], []>} : vector<8x8xbf16>, vector<8x8xbf16>, vector<8x8xf32> -> vector<8x8xf32>
    %47 = arith.addf %46, %22 : vector<8x8xf32>
    %cst_35 = arith.constant dense<0xFF800000> : vector<8xf32>
    %48 = vector.multi_reduction <maximumf>, %47, %cst_35 [1] : vector<8x8xf32> to vector<8xf32>
    %49 = vector.shape_cast %48 : vector<8xf32> to vector<8x1xf32>
    %50 = vector.broadcast %49 : vector<8x1xf32> to vector<8x8xf32>
    %51 = arith.subf %47, %50 : vector<8x8xf32>
    %52 = math.exp %51 : vector<8x8xf32>
    %cst_36 = arith.constant dense<0.000000e+00> : vector<8xf32>
    %53 = vector.multi_reduction <add>, %52, %cst_36 [1] : vector<8x8xf32> to vector<8xf32>
    %54 = vector.shape_cast %53 : vector<8xf32> to vector<8x1xf32>
    %55 = tpu.reciprocal %54 {approx = true} : vector<8x1xf32> -> vector<8x1xf32>
    %56 = vector.broadcast %55 : vector<8x1xf32> to vector<8x8xf32>
    %57 = arith.mulf %52, %56 : vector<8x8xf32>
    %58 = arith.truncf %57 : vector<8x8xf32> to vector<8x8xbf16>
    %cst_37 = arith.constant dense<0.000000e+00> : vector<8x8xf32>
    %59 = tpu.matmul %58, %44, %cst_37 {dimension_numbers = #tpu.dot_dimension_numbers<[1], [0], [0], [1], [0, 0, 1, 1], [], []>} : vector<8x8xbf16>, vector<8x8xbf16>, vector<8x8xf32> -> vector<8x8xf32>
    %c0_38 = arith.constant 0 : index
    %c8_39 = arith.constant 8 : index
    %60 = vector.load %arg8[%c0_38, %c8_39] : memref<8x32xf32, #tpu.memory_space<vmem>>, vector<8x8xf32>
    tpu.vector_store %arg8[%c0_38, %c8_39], %59 {strides = array<i32>} : memref<8x32xf32, #tpu.memory_space<vmem>>, vector<8x8xf32>,
    %c0_40 = arith.constant 0 : index
    %c16 = arith.constant 16 : index
    %61 = vector.load %arg7[%c0_40, %c16] : memref<8x96xbf16, #tpu.memory_space<vmem>>, vector<8x8xbf16>
    %c0_41 = arith.constant 0 : index
    %c48 = arith.constant 48 : index
    %62 = vector.load %arg7[%c0_41, %c48] : memref<8x96xbf16, #tpu.memory_space<vmem>>, vector<8x8xbf16>
    %c0_42 = arith.constant 0 : index
    %c80 = arith.constant 80 : index
    %63 = vector.load %arg7[%c0_42, %c80] : memref<8x96xbf16, #tpu.memory_space<vmem>>, vector<8x8xbf16>
    %64 = tpu.transpose %62, [1, 0] : vector<8x8xbf16> -> vector<8x8xbf16>
    %cst_43 = arith.constant dense<0.000000e+00> : vector<8x8xf32>
    %65 = tpu.matmul %61, %64, %cst_43 {dimension_numbers = #tpu.dot_dimension_numbers<[1], [0], [0], [1], [0, 0, 1, 1], [], []>} : vector<8x8xbf16>, vector<8x8xbf16>, vector<8x8xf32> -> vector<8x8xf32>
    %66 = arith.addf %65, %22 : vector<8x8xf32>
    %cst_44 = arith.constant dense<0xFF800000> : vector<8xf32>
    %67 = vector.multi_reduction <maximumf>, %66, %cst_44 [1] : vector<8x8xf32> to vector<8xf32>
    %68 = vector.shape_cast %67 : vector<8xf32> to vector<8x1xf32>
    %69 = vector.broadcast %68 : vector<8x1xf32> to vector<8x8xf32>
    %70 = arith.subf %66, %69 : vector<8x8xf32>
    %71 = math.exp %70 : vector<8x8xf32>
    %cst_45 = arith.constant dense<0.000000e+00> : vector<8xf32>
    %72 = vector.multi_reduction <add>, %71, %cst_45 [1] : vector<8x8xf32> to vector<8xf32>
    %73 = vector.shape_cast %72 : vector<8xf32> to vector<8x1xf32>
    %74 = tpu.reciprocal %73 {approx = true} : vector<8x1xf32> -> vector<8x1xf32>
    %75 = vector.broadcast %74 : vector<8x1xf32> to vector<8x8xf32>
    %76 = arith.mulf %71, %75 : vector<8x8xf32>
    %77 = arith.truncf %76 : vector<8x8xf32> to vector<8x8xbf16>
    %cst_46 = arith.constant dense<0.000000e+00> : vector<8x8xf32>
    %78 = tpu.matmul %77, %63, %cst_46 {dimension_numbers = #tpu.dot_dimension_numbers<[1], [0], [0], [1], [0, 0, 1, 1], [], []>} : vector<8x8xbf16>, vector<8x8xbf16>, vector<8x8xf32> -> vector<8x8xf32>
    %c0_47 = arith.constant 0 : index
    %c16_48 = arith.constant 16 : index
    %79 = vector.load %arg8[%c0_47, %c16_48] : memref<8x32xf32, #tpu.memory_space<vmem>>, vector<8x8xf32>
    tpu.vector_store %arg8[%c0_47, %c16_48], %78 {strides = array<i32>} : memref<8x32xf32, #tpu.memory_space<vmem>>, vector<8x8xf32>,
    %c0_49 = arith.constant 0 : index
    %c24 = arith.constant 24 : index
    %80 = vector.load %arg7[%c0_49, %c24] : memref<8x96xbf16, #tpu.memory_space<vmem>>, vector<8x8xbf16>
    %c0_50 = arith.constant 0 : index
    %c56 = arith.constant 56 : index
    %81 = vector.load %arg7[%c0_50, %c56] : memref<8x96xbf16, #tpu.memory_space<vmem>>, vector<8x8xbf16>
    %c0_51 = arith.constant 0 : index
    %c88 = arith.constant 88 : index
    %82 = vector.load %arg7[%c0_51, %c88] : memref<8x96xbf16, #tpu.memory_space<vmem>>, vector<8x8xbf16>
    %83 = tpu.transpose %81, [1, 0] : vector<8x8xbf16> -> vector<8x8xbf16>
    %cst_52 = arith.constant dense<0.000000e+00> : vector<8x8xf32>
    %84 = tpu.matmul %80, %83, %cst_52 {dimension_numbers = #tpu.dot_dimension_numbers<[1], [0], [0], [1], [0, 0, 1, 1], [], []>} : vector<8x8xbf16>, vector<8x8xbf16>, vector<8x8xf32> -> vector<8x8xf32>
    %85 = arith.addf %84, %22 : vector<8x8xf32>
    %cst_53 = arith.constant dense<0xFF800000> : vector<8xf32>
    %86 = vector.multi_reduction <maximumf>, %85, %cst_53 [1] : vector<8x8xf32> to vector<8xf32>
    %87 = vector.shape_cast %86 : vector<8xf32> to vector<8x1xf32>
    %88 = vector.broadcast %87 : vector<8x1xf32> to vector<8x8xf32>
    %89 = arith.subf %85, %88 : vector<8x8xf32>
    %90 = math.exp %89 : vector<8x8xf32>
    %cst_54 = arith.constant dense<0.000000e+00> : vector<8xf32>
    %91 = vector.multi_reduction <add>, %90, %cst_54 [1] : vector<8x8xf32> to vector<8xf32>
    %92 = vector.shape_cast %91 : vector<8xf32> to vector<8x1xf32>
    %93 = tpu.reciprocal %92 {approx = true} : vector<8x1xf32> -> vector<8x1xf32>
    %94 = vector.broadcast %93 : vector<8x1xf32> to vector<8x8xf32>
    %95 = arith.mulf %90, %94 : vector<8x8xf32>
    %96 = arith.truncf %95 : vector<8x8xf32> to vector<8x8xbf16>
    %cst_55 = arith.constant dense<0.000000e+00> : vector<8x8xf32>
    %97 = tpu.matmul %96, %82, %cst_55 {dimension_numbers = #tpu.dot_dimension_numbers<[1], [0], [0], [1], [0, 0, 1, 1], [], []>} : vector<8x8xbf16>, vector<8x8xbf16>, vector<8x8xf32> -> vector<8x8xf32>
    %c0_56 = arith.constant 0 : index
    %c24_57 = arith.constant 24 : index
    %98 = vector.load %arg8[%c0_56, %c24_57] : memref<8x32xf32, #tpu.memory_space<vmem>>, vector<8x8xf32>
    tpu.vector_store %arg8[%c0_56, %c24_57], %97 {strides = array<i32>} : memref<8x32xf32, #tpu.memory_space<vmem>>, vector<8x8xf32>,
    %c0_58 = arith.constant 0 : index
    %c0_59 = arith.constant 0 : index
    %99 = vector.load %arg8[%c0_58, %c0_59] : memref<8x32xf32, #tpu.memory_space<vmem>>, vector<8x32xf32>
    %100 = arith.truncf %99 : vector<8x32xf32> to vector<8x32xbf16>
    %cst_60 = arith.constant dense<0.000000e+00> : vector<8x32xf32>
    %101 = tpu.matmul %100, %2, %cst_60 {dimension_numbers = #tpu.dot_dimension_numbers<[1], [0], [0], [1], [0, 0, 1, 1], [], []>} : vector<8x32xbf16>, vector<32x32xbf16>, vector<8x32xf32> -> vector<8x32xf32>
    %102 = vector.broadcast %6 : vector<1x32xf32> to vector<8x32xf32>
    %103 = arith.addf %101, %102 : vector<8x32xf32>
    %104 = arith.addf %0, %103 : vector<8x32xf32>
    %cst_61 = arith.constant dense<0.000000e+00> : vector<8xf32>
    %105 = vector.multi_reduction <add>, %104, %cst_61 [1] : vector<8x32xf32> to vector<8xf32>
    %106 = vector.shape_cast %105 : vector<8xf32> to vector<8x1xf32>
    %cst_62 = arith.constant 3.125000e-02 : f32
    %107 = vector.broadcast %cst_62 : f32 to vector<8x1xf32>
    %108 = arith.mulf %106, %107 : vector<8x1xf32>
    %109 = vector.broadcast %108 : vector<8x1xf32> to vector<8x32xf32>
    %110 = arith.subf %104, %109 : vector<8x32xf32>
    %111 = arith.mulf %110, %110 : vector<8x32xf32>
    %cst_63 = arith.constant dense<0.000000e+00> : vector<8xf32>
    %112 = vector.multi_reduction <add>, %111, %cst_63 [1] : vector<8x32xf32> to vector<8xf32>
    %113 = vector.shape_cast %112 : vector<8xf32> to vector<8x1xf32>
    %cst_64 = arith.constant 0.0322580636 : f32
    %114 = vector.broadcast %cst_64 : f32 to vector<8x1xf32>
    %115 = arith.mulf %113, %114 : vector<8x1xf32>
    %116 = math.sqrt %115 : vector<8x1xf32>
    %cst_65 = arith.constant 9.99999997E-7 : f32
    %117 = vector.broadcast %cst_65 : f32 to vector<8x1xf32>
    %118 = arith.addf %116, %117 : vector<8x1xf32>
    %119 = tpu.reciprocal %118 {approx = true} : vector<8x1xf32> -> vector<8x1xf32>
    %120 = vector.broadcast %119 : vector<8x1xf32> to vector<8x32xf32>
    %121 = arith.mulf %110, %120 : vector<8x32xf32>
    %122 = vector.broadcast %9 : vector<1x32xf32> to vector<8x32xf32>
    %123 = arith.mulf %122, %121 : vector<8x32xf32>
    %124 = vector.broadcast %10 : vector<1x32xf32> to vector<8x32xf32>
    %125 = arith.addf %123, %124 : vector<8x32xf32>
    %126 = arith.truncf %125 : vector<8x32xf32> to vector<8x32xbf16>
    %cst_66 = arith.constant dense<0.000000e+00> : vector<8x64xf32>
    %127 = tpu.matmul %126, %3, %cst_66 {dimension_numbers = #tpu.dot_dimension_numbers<[1], [0], [0], [1], [0, 0, 1, 1], [], []>} : vector<8x32xbf16>, vector<32x64xbf16>, vector<8x64xf32> -> vector<8x64xf32>
    %128 = vector.broadcast %7 : vector<1x64xf32> to vector<8x64xf32>
    %129 = arith.addf %127, %128 : vector<8x64xf32>
    %cst_67 = arith.constant 0.000000e+00 : f32
    %130 = vector.broadcast %cst_67 : f32 to vector<8x64xf32>
    %131 = arith.maximumf %129, %130 : vector<8x64xf32>
    %132 = arith.truncf %131 : vector<8x64xf32> to vector<8x64xbf16>
    %cst_68 = arith.constant dense<0.000000e+00> : vector<8x32xf32>
    %133 = tpu.matmul %132, %4, %cst_68 {dimension_numbers = #tpu.dot_dimension_numbers<[1], [0], [0], [1], [0, 0, 1, 1], [], []>} : vector<8x64xbf16>, vector<64x32xbf16>, vector<8x32xf32> -> vector<8x32xf32>
    %134 = vector.broadcast %8 : vector<1x32xf32> to vector<8x32xf32>
    %135 = arith.addf %133, %134 : vector<8x32xf32>
    %136 = arith.addf %125, %135 : vector<8x32xf32>
    %cst_69 = arith.constant dense<0.000000e+00> : vector<8xf32>
    %137 = vector.multi_reduction <add>, %136, %cst_69 [1] : vector<8x32xf32> to vector<8xf32>
    %138 = vector.shape_cast %137 : vector<8xf32> to vector<8x1xf32>
    %cst_70 = arith.constant 3.125000e-02 : f32
    %139 = vector.broadcast %cst_70 : f32 to vector<8x1xf32>
    %140 = arith.mulf %138, %139 : vector<8x1xf32>
    %141 = vector.broadcast %140 : vector<8x1xf32> to vector<8x32xf32>
    %142 = arith.subf %136, %141 : vector<8x32xf32>
    %143 = arith.mulf %142, %142 : vector<8x32xf32>
    %cst_71 = arith.constant dense<0.000000e+00> : vector<8xf32>
    %144 = vector.multi_reduction <add>, %143, %cst_71 [1] : vector<8x32xf32> to vector<8xf32>
    %145 = vector.shape_cast %144 : vector<8xf32> to vector<8x1xf32>
    %cst_72 = arith.constant 0.0322580636 : f32
    %146 = vector.broadcast %cst_72 : f32 to vector<8x1xf32>
    %147 = arith.mulf %145, %146 : vector<8x1xf32>
    %148 = math.sqrt %147 : vector<8x1xf32>
    %cst_73 = arith.constant 9.99999997E-7 : f32
    %149 = vector.broadcast %cst_73 : f32 to vector<8x1xf32>
    %150 = arith.addf %148, %149 : vector<8x1xf32>
    %151 = tpu.reciprocal %150 {approx = true} : vector<8x1xf32> -> vector<8x1xf32>
    %152 = vector.broadcast %151 : vector<8x1xf32> to vector<8x32xf32>
    %153 = arith.mulf %142, %152 : vector<8x32xf32>
    %154 = vector.broadcast %11 : vector<1x32xf32> to vector<8x32xf32>
    %155 = arith.mulf %154, %153 : vector<8x32xf32>
    %156 = vector.broadcast %12 : vector<1x32xf32> to vector<8x32xf32>
    %157 = arith.addf %155, %156 : vector<8x32xf32>
    %c0_74 = arith.constant 0 : index
    %c0_75 = arith.constant 0 : index
    %158 = vector.load %arg6[%c0_74, %c0_75] : memref<8x32xf32, #tpu.memory_space<vmem>>, vector<8x32xf32>
    tpu.vector_store %arg6[%c0_74, %c0_75], %157 {strides = array<i32>} : memref<8x32xf32, #tpu.memory_space<vmem>>, vector<8x32xf32>,
    return
  }
  func.func @transform_0(%arg0: i32) -> (i32, i32) {
    %c0_i32 = arith.constant 0 : i32
    %c0_i32_0 = arith.constant 0 : i32
    return %arg0, %c0_i32 : i32, i32
  }
  func.func @transform_1(%arg0: i32) -> (i32, i32, i32) {
    %c0_i32 = arith.constant 0 : i32
    %c0_i32_0 = arith.constant 0 : i32
    %c0_i32_1 = arith.constant 0 : i32
    return %arg0, %c0_i32, %c0_i32_0 : i32, i32, i32
  }
  func.func @transform_2(%arg0: i32) -> (i32, i32) {
    %c0_i32 = arith.constant 0 : i32
    %c0_i32_0 = arith.constant 0 : i32
    %c0_i32_1 = arith.constant 0 : i32
    return %c0_i32, %c0_i32_0 : i32, i32
  }
  func.func @transform_3(%arg0: i32) -> (i32, i32) {
    %c0_i32 = arith.constant 0 : i32
    %c0_i32_0 = arith.constant 0 : i32
    %c0_i32_1 = arith.constant 0 : i32
    return %c0_i32, %c0_i32_0 : i32, i32
  }
  func.func @transform_4(%arg0: i32) -> (i32, i32) {
    %c0_i32 = arith.constant 0 : i32
    %c0_i32_0 = arith.constant 0 : i32
    %c0_i32_1 = arith.constant 0 : i32
    return %c0_i32, %c0_i32_0 : i32, i32
  }
  func.func @transform_5(%arg0: i32) -> (i32, i32) {
    %c0_i32 = arith.constant 0 : i32
    %c0_i32_0 = arith.constant 0 : i32
    return %arg0, %c0_i32 : i32, i32
  }
}

</mosaic_0001>

<bundles_post_ra>
// kernel: tpu_custom_call.1
= control target key start
LH: loop header
LB: loop body
LE: loop exit
PB: predicated region body
PF: predicated region fallthrough
CT: control target
= control target key end

     0   :  { %10 = vsyncpa [#allocation5], 0  ;;  %s1811_s0 = inlined_call_operand.vmem [shape: f32[16,32], index: 0, kind: input, shape index: {}]   ;;  %s1812_s1 = inlined_call_operand.vmem [shape: f32[2,1,8], index: 1, kind: input, shape index: {}]   ;;  %s1813_s2 = inlined_call_operand.vmem [shape: bf16[32,192], index: 2, kind: input, shape index: {}]   ;;  %s1814_s3 = inlined_call_operand.vmem [shape: bf16[64,32], index: 3, kind: input, shape index: {}]   ;;  %s1815_s4 = inlined_call_operand.hbm [shape: f32[8,96], index: 4, kind: input, shape index: {}]   ;;  %s1816_s5 = inlined_call_operand.hbm [shape: f32[16,32], index: 5, kind: output, shape index: {}]  }
   0x1   :  { %11 = vsyncpa [#allocation6], 0 }
   0x2   :  { %13 = vsyncpa [#allocation6 + $0x1], 0  ;;  %s1568_s18 = smov 0   ;;  %s1570_s19 = smov 0  }
   0x3   :  { %s1572_s20 = smov 0   ;;  %s1574_s21 = smov 0  }
   0x4 LB: > { %s1589_s22 = sadd.s32 4294967295, %s1517_s21   ;;  %s1165_s23 = sadd.s32 4294967294, %s1517_s21   ;;  %s1517_s21 = sphi %s1574_s21, %s1824_s21   ;;  %s1513_s20 = sphi %s1572_s20, %s1823_s20   ;;  %s1509_s19 = sphi %s1570_s19, %s1822_s19   ;;  %s1505_s18 = sphi %s1568_s18, %s1821_s18  }
   0x5   : > { %s1593_s24 = sadd.s32 1, %s1517_s21   ;;  %s141_s25 = sadd.s32 1, %s1513_s20 }
   0x6   : > { %s138_s26 = ssub.s32 %s1517_s21, %s1593_s24  ;;  %p151_p0 = scmp.ne.s32.totalorder %s1513_s20, %s1509_s19 }
   0x7   : > { %p139_p1 = scmp.eq.s32.totalorder %s138_s26, 0  ;;  %p152_p2 = scmp.eq.s32.totalorder %s1589_s22, 1 }
   0x8   : > { %p157_p3 = scmp.ne.s32.totalorder %s1509_s19, %s1505_s18  ;;  %p158_p4 = scmp.eq.s32.totalorder %s1165_s23, 1 }
   0x9   : > { %s1604_s27 = scalar_select %p139_p1, %s1513_s20, %s141_s25  }
   0xa   : > { %p1606_p5 = por %p152_p2, %p151_p0  ;;  %p1610_p6 = por %p158_p4, %p157_p3 }
   0xb   : > { %p1166_p7 = scmp.ge.s32.totalorder %s1517_s21, 1  ;;  %p165_p8 = scmp.lt.s32.totalorder %s1517_s21, 3 }
   0xc   : > { %s1818_s29 = scalar_select %p1610_p6, 1, 0 }
   0xd   : > { %p1338_p9 = scmp.eq.s32.totalorder %s1589_s22, 0  ;;  %p1617_p10 = pnand %p1166_p7, %p165_p8 }
   0xe   : > { %s1519_s6 = smov [#allocation4]  }
   0xf   : > { %s184_s7 = sshll.u32 %s1519_s6, 4  ;;  %p1330_p11 = pneg %p1617_p10  ;;  %s185_s7 = int_to_ptr.vmem [resolvable:$true] %s184_s7 }
  0x10   : > { %s1438_s8 = scalar_lea.vmem %s185_s7, 128  ;;  %p1446_p3 = scmp.lt.s32.totalorder %s185_s7, %s185_s7 }
  0x11   : > { %p1331_p12 = pnand %p1338_p9, %p1330_p11  ;;  %p1439_p0 = scmp.ne.s32.totalorder %s185_s7, %s1438_s8 }
  0x12   : > { %p1447_p4 = scmp.lt.s32.totalorder %s1438_s8, %s1438_s8 }
  0x13   : > { %p1429_p13 = pneg %p1331_p12 }
  0x14   : > { %p1448_p6 = por %p1447_p4, %p1446_p3 }
  0x15   : > { %p1441_p1 = pnand %p1439_p0, %p1429_p13 }
  0x17   : > { %p1442_p2 = pneg %p1441_p1 }
  0x19   : > { %p1449_p7 = pnand %p1448_p6, %p1442_p2 }
  0x1b   : > { %1452 = shalt.err (!%p1449_p7)
}
  0x1c   : > { %1333 = dma.hbm_to_vmem [thread:$0]  (!%p1331_p12), %s1815_s4, 128, %s185_s7, [#allocation5]  }
  0x1d   : > { %210 = sbr.rel (%p1617_p10) target bundleno = 2524 (0x9dc), region = 40 }
  0x22   : > { %1496 = dma.done.wait (%p1338_p9), [#allocation5], 128  }
  0x23   : > { %1498 = vsyncadd (%p1338_p9), [#allocation5], 4294967168  ;;  %p240_p8 = scmp.lt.s32.totalorder %s1589_s22, 1  ;;  %v1520_v0 = vmov 0.0   ;;  %vm1521_vm0 = vmmov 0   ;;  %vm290_vm1 = vcmask 261120  }
  0x24   : > { %1240 = vmatprep.subr.bf16.mxu0 %v1520_v0  ;;  %1244 = vmatprep.mubr.msk.bf16.mxu0 %vm1521_vm0, %v1520_v0  ;;  %v1651_v1 = vld [vmem:[%s1813_s2 + $0x10] ss:$8 sps:$4 sm:$0xff]   ;;  %v1657_v2 = vld [vmem:[%s1813_s2] ss:$8 sps:$4 sm:$0xff]   ;;  %v1173_v5 = vld [vmem:[#allocation4] ss:$0 sm:$0xff] }
  0x25   : > { %s1639_s11 = scalar_select %p240_p8, %s1589_s22, 1  ;;  %1248 = vmatprep.subr.bf16.mxu1 %v1520_v0  ;;  %1250 = vmatprep.mubr.msk.bf16.mxu1 %vm1521_vm0, %v1520_v0  ;;  %vm335_vm2 = vcmask 781312   ;;  %vm350_vm3 = vcmask 64512   ;;  %vm414_vm4 = vcmask 1043456   ;;  %vm577_vm5 = vcmask 130112  }
  0x26   : > { %1241 = vmatpush3.bf16.msra.mxu0 %v1651_v1  ;;  %s1522_s26 = smov 120   ;;  %s1523_s30 = smov 96   ;;  %vm697_vm6 = vcmask 195712   ;;  %vm817_vm7 = vcmask 261312   ;;  %vm995_vm10 = vcmask 523264  }
  0x27   : > { %s1172_s12 = sshll.u32 %s1639_s11, 3  ;;  %1242 = vmatprep.subr.bf16.mxu0 %v1520_v0  ;;  %s1524_s6 = smov 80  }
  0x28   : > { %s243_s15 = scalar_lea.vmem %s1811_s0, %s1172_s12  ;;  %s1525_s7 = smov 88  }
  0x29   : > { %v1659_v3 = vld [vmem:[%s243_s15] sm:$0xff]  ;;  %s1526_s8 = smov 72   ;;  %s1527_s9 = smov 112  }
  0x2a   : > { %v273_v4 = vpack.c.bf16 %v1659_v3, %v1659_v3  ;;  %1243 = vmatpush3.bf16.msra.mxu0 %v1657_v2  ;;  %s1528_s10 = smov 104   ;;  %s246_s14 = scalar_lea.vmem %s1812_s1, %s1639_s11 }
  0x2b   : > { %1254 = vmatprep.subr.bf16.mxu0 %v1520_v0  ;;  %v1177_v28 = vld [vmem:[%s246_s14] ss:$0 sm:$0xff]  ;;  %s1529_s11 = smov 56   ;;  %s1530_s15 = smov 64  }
  0x2c   : > { %s1531_s16 = smov 40   ;;  %s1532_s17 = smov 48  }
  0x2d   : > { %1245 = vmatmul.mubr.msk.bf16.vlgmr.msra.gmra.mxu0 %vm290_vm1, %v273_v4  ;;  %s1533_s23 = smov 8   ;;  %s1534_s25 = smov 16  }
  0x2e   : > { %1256 = vmatprep.mubr.msk.bf16.mxu0 %vm1521_vm0, %v1520_v0  ;;  %s1537_s13 = smov [#allocation7]  }
  0x2f   : > { %s1457_s14 = sshll.u32 %s1537_s13, 4  ;;  %s1458_s14 = int_to_ptr.vmem [resolvable:$false] %s1457_s14 }
  0xed   : > { %v328_v6 = vpop.f32.mrf.mxu0 }
  0xee   : > { %v329_v7 = vadd.f32 %v1173_v5, %v328_v6 }
  0xef   : > { %v1246_v8 = vpop.f32.mrf.mxu0 }
  0xf0   : > { %v334_v9 = vpack.c.bf16 %v329_v7, %v329_v7 }
  0xf1   : > { %v331_v10 = vpop.f32.mrf.mxu0 }
  0xf2   : > { %336 = vst.msk [vmem:[#allocation2] sm:$0xf] %vm335_vm2, %v334_v9 }
  0xf3   : > { %v1247_v11 = vpop.f32.mrf.mxu0 }
  0xf9   : > { %v1669_v12 = vld [vmem:[#allocation2] ss:$0 sps:$4 sm:$0xff]  }
  0xfa   : > { %v344_v13 = vld [vmem:[#allocation2] sm:$0xf]  ;;  %463 = vrot.lane.b32.xlu1 %v1669_v12, %s1522_s26  ;;  %s1535_s26 = smov 32  }
  0xfb   : > { %v1671_v14 = vcombine.low %v344_v13, %v344_v13  ;;  %v1675_v15 = vld [vmem:[#allocation2] ss:$0 sps:$4 sm:$0xff]  }
  0xfc   : > { %v1679_v16 = vld [vmem:[#allocation2] ss:$0 sps:$4 sm:$0xff]  }
  0xfd   : > { %348 = vrot.lane.b32.xlu0 %v1671_v14, %s1523_s30  ;;  %s1536_s30 = smov 24  }
  0xfe   : > { %585 = vrot.lane.b32.xlu1 %v1675_v15, %s1524_s6 }
 0x101   : > { %465 = vrot.lane.b32.xlu0 %v1669_v12, %s1525_s7 }
 0x102   : > { %705 = vrot.lane.b32.xlu1 %v1679_v16, %s1526_s8 }
 0x105   : > { %583 = vrot.lane.b32.xlu0 %v1675_v15, %s1527_s9 }
 0x109   : > { %703 = vrot.lane.b32.xlu0 %v1679_v16, %s1528_s10 }
 0x16c   : > { %v464_v20 = vpop.permute.xlu1 %463 }
 0x16f   : > { %v349_v17 = vpop.permute.xlu0 %348 }
 0x170   : > { %v355_v18 = vsel %vm350_vm3, %v349_v17, 0  ;;  %v586_v22 = vpop.permute.xlu1 %585 }
 0x171   : > { %1249 = vmatpush3.bf16.xpose.msra.mxu1 %v355_v18  ;;  %v591_v23 = vsel %vm350_vm3, %v586_v22, 0 }
 0x172   : > { %1260 = vmatprep.subr.bf16.mxu1 %v1520_v0 }
 0x173   : > { %v466_v19 = vpop.permute.xlu0 %465 }
 0x174   : > { %v471_v21 = vsel %vm350_vm3, %v466_v19, 0  ;;  %v706_v24 = vpop.permute.xlu1 %705 }
 0x175   : > { %v711_v26 = vsel %vm350_vm3, %v706_v24, 0 }
 0x177   : > { %v584_v25 = vpop.permute.xlu0 %583 }
 0x178   : > { %1251 = vmatmul.mubr.msk.bf16.vlgmr.msra.gmra.mxu1 %vm350_vm3, %v344_v13 }
 0x179   : > { %1261 = vmatpush3.bf16.xpose.msra.mxu1 %v471_v21  ;;  %1262 = vmatprep.mubr.msk.bf16.mxu1 %vm1521_vm0, %v1520_v0 }
 0x17a   : > { %1272 = vmatprep.subr.bf16.mxu1 %v1520_v0 }
 0x17b   : > { %v704_v27 = vpop.permute.xlu0 %703 }
 0x180   : > { %1263 = vmatmul.mubr.msk.bf16.vlgmr.msra.gmra.mxu1 %vm350_vm3, %v464_v20 }
 0x181   : > { %1273 = vmatpush3.bf16.xpose.msra.mxu1 %v591_v23  ;;  %1274 = vmatprep.mubr.msk.bf16.mxu1 %vm1521_vm0, %v1520_v0 }
 0x182   : > { %1284 = vmatprep.subr.bf16.mxu1 %v1520_v0 }
 0x188   : > { %1275 = vmatmul.mubr.msk.bf16.vlgmr.msra.gmra.mxu1 %vm350_vm3, %v584_v25 }
 0x189   : > { %1285 = vmatpush3.bf16.xpose.msra.mxu1 %v711_v26  ;;  %1286 = vmatprep.mubr.msk.bf16.mxu1 %vm1521_vm0, %v1520_v0 }
 0x18a   : > { %1296 = vmatprep.subr.bf16.mxu1 %v1520_v0 }
 0x190   : > { %1287 = vmatmul.mubr.msk.bf16.vlgmr.msra.gmra.mxu1 %vm350_vm3, %v704_v27 }
 0x191   : > { %1300 = vmatprep.mubr.msk.bf16.mxu1 %vm1521_vm0, %v1520_v0 }
 0x238   : > { %v391_v29 = vpop.f32.mrf.mxu1 }
 0x239   : > { %v392_v30 = vadd.f32 %v1177_v28, %v391_v29 }
 0x23a   : > { %v1252_v31 = vpop.f32.mrf.mxu1 }
 0x23b   : > { %v397_v32 = vsel %vm350_vm3, %v392_v30, -inf }
 0x23c   : > { %398 = vmax.xlane.f32.xlu1 %v397_v32  ;;  %v394_v33 = vpop.f32.mrf.mxu1 }
 0x23e   : > { %v1253_v34 = vpop.f32.mrf.mxu1 }
 0x240   : > { %v507_v35 = vpop.f32.mrf.mxu1 }
 0x241   : > { %v508_v36 = vadd.f32 %v1177_v28, %v507_v35 }
 0x242   : > { %v1264_v37 = vpop.f32.mrf.mxu1 }
 0x243   : > { %v513_v38 = vsel %vm350_vm3, %v508_v36, -inf }
 0x244   : > { %514 = vmax.xlane.f32.xlu0 %v513_v38  ;;  %v510_v39 = vpop.f32.mrf.mxu1 }
 0x246   : > { %v1265_v40 = vpop.f32.mrf.mxu1 }
 0x248   : > { %v627_v41 = vpop.f32.mrf.mxu1 }
 0x249   : > { %v628_v42 = vadd.f32 %v1177_v28, %v627_v41 }
 0x24a   : > { %v1276_v43 = vpop.f32.mrf.mxu1 }
 0x24b   : > { %v633_v44 = vsel %vm350_vm3, %v628_v42, -inf }
 0x24c   : > { %634 = vmax.xlane.f32.xlu0 %v633_v44  ;;  %v630_v45 = vpop.f32.mrf.mxu1 }
 0x24e   : > { %v1277_v46 = vpop.f32.mrf.mxu1 }
 0x250   : > { %v747_v47 = vpop.f32.mrf.mxu1 }
 0x251   : > { %v748_v48 = vadd.f32 %v1177_v28, %v747_v47 }
 0x252   : > { %v1288_v49 = vpop.f32.mrf.mxu1 }
 0x253   : > { %v753_v50 = vsel %vm350_vm3, %v748_v48, -inf }
 0x254   : > { %754 = vmax.xlane.f32.xlu1 %v753_v50  ;;  %v750_v51 = vpop.f32.mrf.mxu1 }
 0x256   : > { %v1289_v52 = vpop.f32.mrf.mxu1 }
 0x2c5   : > { %v399_v53 = vpop.xlane.xlu1 %398 }
 0x2c6   : > { %v400_v54 = vsub.f32 %v392_v30, %v399_v53 }
 0x2c8   : > { %v401_v55 = vmul.f32 1.442695, %v400_v54 }
 0x2ca   : > { %1403 = vpow2.f32 %v401_v55 }
 0x2cd   : > { %v515_v56 = vpop.xlane.xlu0 %514 }
 0x2ce   : > { %v516_v57 = vsub.f32 %v508_v36, %v515_v56 }
 0x2d0   : > { %v517_v58 = vmul.f32 1.442695, %v516_v57 }
 0x2d2   : > { %1405 = vpow2.f32 %v517_v58  ;;  %v1190_v58 = vld [vmem:[#allocation4 + $0x1] ss:$0 sm:$0xff] }
 0x2d5   : > { %v635_v59 = vpop.xlane.xlu0 %634 }
 0x2d6   : > { %v636_v60 = vsub.f32 %v628_v42, %v635_v59 }
 0x2d7   : > { %v1404_v61 = vpop.eup %1403 }
 0x2d8   : > { %v637_v62 = vmul.f32 1.442695, %v636_v60  ;;  %v403_v63 = vsel %vm350_vm3, %v1404_v61, 0.0 }
 0x2d9   : > { %404 = vadd.xlane.f32.xlu0 %v403_v63 }
 0x2da   : > { %1407 = vpow2.f32 %v637_v62 }
 0x2dd   : > { %v755_v8 = vpop.xlane.xlu1 %754 }
 0x2de   : > { %v756_v9 = vsub.f32 %v748_v48, %v755_v8 }
 0x2df   : > { %v1406_v4 = vpop.eup %1405 }
 0x2e0   : > { %v519_v5 = vsel %vm350_vm3, %v1406_v4, 0.0  ;;  %v757_v10 = vmul.f32 1.442695, %v756_v9 }
 0x2e1   : > { %520 = vadd.xlane.f32.xlu1 %v519_v5 }
 0x2e2   : > { %1409 = vpow2.f32 %v757_v10 }
 0x2e7   : > { %v1408_v6 = vpop.eup %1407 }
 0x2e8   : > { %v639_v7 = vsel %vm350_vm3, %v1408_v6, 0.0 }
 0x2e9   : > { %640 = vadd.xlane.f32.xlu0 %v639_v7 }
 0x2ef   : > { %v1410_v11 = vpop.eup %1409 }
 0x2f0   : > { %v759_v13 = vsel %vm350_vm3, %v1410_v11, 0.0 }
 0x2f2   : > { %525 = vrot.lane.b32.xlu1 %v1669_v12, %s1529_s11 }
 0x2ff   : > { %409 = vrot.lane.b32.xlu0 %v1671_v14, %s1530_s15 }
 0x303   : > { %765 = vrot.lane.b32.xlu0 %v1679_v16, %s1531_s16 }
 0x316   : > { %760 = vadd.xlane.f32.xlu1 %v759_v13  ;;  %v1399_v13 = vld [vmem:[%s1814_s3 + $0x18] sm:$0xff]  }
 0x327   : > { %645 = vrot.lane.b32.xlu1 %v1675_v15, %s1532_s17 }
 0x362   : > { %v405_v17 = vpop.xlane.xlu0 %404 }
 0x363   : > { %1411 = vrcp.f32 %v405_v17  ;;  %v1400_v17 = vld [vmem:[%s1814_s3 + $0x10] sm:$0xff]  }
 0x36a   : > { %v521_v12 = vpop.xlane.xlu1 %520 }
 0x36b   : > { %1413 = vrcp.f32 %v521_v12 }
 0x36e   : > { %v526_v16 = vpop.permute.xlu1 %525 }
 0x36f   : > { %v531_v24 = vsel %vm414_vm4, %v526_v16, 0 }
 0x370   : > { %v1412_v18 = vpop.eup %1411 }
 0x371   : > { %v407_v20 = vmul.f32 %v1412_v18, %v1404_v61 }
 0x372   : > { %v641_v19 = vpop.xlane.xlu0 %640 }
 0x373   : > { %v408_v22 = vpack.c.bf16 %v407_v20, %v407_v20  ;;  %1415 = vrcp.f32 %v641_v19 }
 0x376   : > { %v410_v14 = vpop.permute.xlu0 %409 }
 0x377   : > { %v416_v21 = vsel %vm414_vm4, %v410_v14, 0 }
 0x378   : > { %1255 = vmatpush3.bf16.msra.mxu0 %v416_v21  ;;  %v1414_v23 = vpop.eup %1413 }
 0x379   : > { %1266 = vmatprep.subr.bf16.mxu0 %v1520_v0  ;;  %v523_v15 = vmul.f32 %v1414_v23, %v1406_v4 }
 0x37a   : > { %v766_v31 = vpop.permute.xlu0 %765 }
 0x37b   : > { %1257 = vmatmul.mubr.msk.bf16.vlgmr.msra.gmra.mxu0 %vm350_vm3, %v408_v22  ;;  %v524_v25 = vpack.c.bf16 %v523_v15, %v523_v15  ;;  %v771_v33 = vsel %vm414_vm4, %v766_v31, 0  ;;  %v1194_v31 = vld [vmem:[#allocation4 + $0x2] ss:$0 sm:$0xff] }
 0x37c   : > { %1267 = vmatpush3.bf16.msra.mxu0 %v531_v24  ;;  %1268 = vmatprep.mubr.msk.bf16.mxu0 %vm1521_vm0, %v1520_v0  ;;  %v1192_v24 = vld [vmem:[#allocation4 + $0x4] ss:$0 sm:$0xff] }
 0x37d   : > { %1278 = vmatprep.subr.bf16.mxu0 %v1520_v0 }
 0x380   : > { %v1416_v26 = vpop.eup %1415 }
 0x381   : > { %v643_v28 = vmul.f32 %v1416_v26, %v1408_v6 }
 0x383   : > { %1269 = vmatmul.mubr.msk.bf16.vlgmr.msra.gmra.mxu0 %vm350_vm3, %v524_v25  ;;  %v644_v32 = vpack.c.bf16 %v643_v28, %v643_v28  ;;  %v1193_v25 = vld [vmem:[#allocation4 + $0x5] ss:$0 sm:$0xff] }
 0x384   : > { %1280 = vmatprep.mubr.msk.bf16.mxu0 %vm1521_vm0, %v1520_v0 }
 0x39f   : > { %v761_v27 = vpop.xlane.xlu1 %760 }
 0x3a0   : > { %1417 = vrcp.f32 %v761_v27 }
 0x3a3   : > { %v646_v29 = vpop.permute.xlu1 %645 }
 0x3a4   : > { %v651_v30 = vsel %vm414_vm4, %v646_v29, 0  ;;  %v1401_v29 = vld [vmem:[%s1814_s3 + $0x8] sm:$0xff]  }
 0x3a5   : > { %1279 = vmatpush3.bf16.msra.mxu0 %v651_v30  ;;  %v1402_v30 = vld [vmem:[%s1814_s3] sm:$0xff]  }
 0x3a6   : > { %1290 = vmatprep.subr.bf16.mxu0 %v1520_v0 }
 0x3a8   : > { %1281 = vmatmul.mubr.msk.bf16.vlgmr.msra.gmra.mxu0 %vm350_vm3, %v644_v32 }
 0x3a9   : > { %1291 = vmatpush3.bf16.msra.mxu0 %v771_v33  ;;  %1292 = vmatprep.mubr.msk.bf16.mxu0 %vm1521_vm0, %v1520_v0 }
 0x3aa   : > { %1304 = vmatprep.subr.bf16.mxu0 %v1520_v0 }
 0x3ad   : > { %v1418_v34 = vpop.eup %1417 }
 0x3ae   : > { %v763_v35 = vmul.f32 %v1418_v34, %v1410_v11  ;;  %v1397_v11 = vld [vmem:[%s1813_s2 + $0x14] ss:$8 sps:$4 sm:$0xff]  }
 0x3b0   : > { %v764_v36 = vpack.c.bf16 %v763_v35, %v763_v35 }
 0x3b2   : > { %1293 = vmatmul.mubr.msk.bf16.vlgmr.msra.gmra.mxu0 %vm350_vm3, %v764_v36 }
 0x3b3   : > { %1308 = vmatprep.mubr.msk.bf16.mxu0 %vm1521_vm0, %v1520_v0  ;;  %1305 = vmatpush3.bf16.msra.mxu0 %v1397_v11 }
 0x3b4   : > { %1306 = vmatprep.subr.bf16.mxu0 %v1520_v0 }
 0x43b   : > { %v452_v37 = vpop.f32.mrf.mxu0 }
 0x43c   : > { %458 = vst.msk [vmem:[#allocation3] sm:$0xff] %vm350_vm3, %v452_v37 }
 0x43d   : > { %v1258_v38 = vpop.f32.mrf.mxu0 }
 0x43f   : > { %v455_v39 = vpop.f32.mrf.mxu0 }
 0x440   : > { %v1198_v39 = vld [vmem:[#allocation4 + $0x3] ss:$0 sm:$0xff] }
 0x441   : > { %v1259_v40 = vpop.f32.mrf.mxu0 }
 0x443   : > { %v567_v41 = vpop.f32.mrf.mxu0 }
 0x444   : > { %574 = vrot.lane.b32.xlu1 %v567_v41, %s1533_s23  ;;  %s237_s23 = sand.u32 1, %s1509_s19  }
 0x445   : > { %v1270_v42 = vpop.f32.mrf.mxu0  ;;  %s1072_s10 = scalar_lea.sflag [#allocation6], %s237_s23 }
 0x447   : > { %v570_v43 = vpop.f32.mrf.mxu0 }
 0x449   : > { %v1271_v44 = vpop.f32.mrf.mxu0 }
 0x468   : > { %v687_v45 = vpop.f32.mrf.mxu0 }
 0x469   : > { %694 = vrot.lane.b32.xlu0 %v687_v45, %s1534_s25  ;;  %s1171_s25 = sshll.u32 %s237_s23, 3 }
 0x46a   : > { %v1282_v46 = vpop.f32.mrf.mxu0 }
 0x46c   : > { %v690_v47 = vpop.f32.mrf.mxu0 }
 0x46d   : > { %827 = vrot.lane.b32.xlu0 %v1651_v1, %s1535_s26 }
 0x46e   : > { %v1283_v48 = vpop.f32.mrf.mxu0 }
 0x472   : > { %v807_v49 = vpop.f32.mrf.mxu0 }
 0x473   : > { %814 = vrot.lane.b32.xlu1 %v807_v49, %s1536_s30  ;;  %s239_s30 = scalar_lea.vmem [#allocation7], %s1171_s25 }
 0x474   : > { %v1294_v50 = vpop.f32.mrf.mxu0  ;;  %s1085_s6 = sshll.u32 %s239_s30, 4  ;;  %s1086_s6 = int_to_ptr.vmem [resolvable:$true] %s1085_s6 }
 0x475   : > { %s1453_s12 = scalar_lea.vmem %s1086_s6, 128  ;;  %p1460_p11 = scmp.lt.s32.totalorder %s1086_s6, %s1458_s14 }
 0x476   : > { %v810_v51 = vpop.f32.mrf.mxu0  ;;  %p1454_p6 = scmp.ne.s32.totalorder %s1086_s6, %s1453_s12 }
 0x477   : > { %825 = vrot.lane.b32.xlu1 %v1657_v2, %s1535_s26  ;;  %s1207_s26 = sshll.u32 %s1589_s22, 7  ;;  %s1459_s22 = scalar_lea.vmem %s1458_s14, 256 }
 0x478   : > { %v1295_v52 = vpop.f32.mrf.mxu0  ;;  %s1083_s9 = scalar_lea.hbm %s1816_s5, %s1207_s26  ;;  %p1455_p9 = pnand %p1454_p6, %p1606_p5 }
 0x479   : > { %p1461_p12 = scmp.lt.s32.totalorder %s1459_s22, %s1453_s12 }
 0x47a   : > { %p1456_p10 = pneg %p1455_p9 }
 0x47b   : > { %p1462_p13 = por %p1461_p12, %p1460_p11 }
 0x47d   : > { %p1463_p0 = pnand %p1462_p13, %p1456_p10 }
 0x4b6   : > { %v575_v53 = vpop.permute.xlu1 %574 }
 0x4b7   : > { %578 = vst.msk [vmem:[#allocation3] sm:$0xff] %vm577_vm5, %v575_v53 }
 0x4db   : > { %v695_v54 = vpop.permute.xlu0 %694 }
 0x4dc   : > { %698 = vst.msk [vmem:[#allocation3] sm:$0xff] %vm697_vm6, %v695_v54 }
 0x4df   : > { %v828_v55 = vpop.permute.xlu0 %827 }
 0x4e0   : > { %1297 = vmatpush3.bf16.msra.mxu1 %v828_v55 }
 0x4e1   : > { %1298 = vmatprep.subr.bf16.mxu1 %v1520_v0 }
 0x4e5   : > { %v815_v1 = vpop.permute.xlu1 %814 }
 0x4e6   : > { %818 = vst.msk [vmem:[#allocation3] sm:$0xff] %vm817_vm7, %v815_v1 }
 0x4e9   : > { %v826_v56 = vpop.permute.xlu1 %825 }
 0x4ea   : > { %1299 = vmatpush3.bf16.msra.mxu1 %v826_v56 }
 0x4eb   : > { %1312 = vmatprep.subr.bf16.mxu1 %v1520_v0 }
 0x4ed   : > { %v819_v57 = vld [vmem:[#allocation3] sm:$0xff] }
 0x4ee   : > { %v820_v2 = vpack.c.bf16 %v819_v57, %v819_v57 }
 0x4f0   : > { %1301 = vmatmul.mubr.msk.bf16.vlgmr.msra.gmra.mxu1 %vm290_vm1, %v820_v2 }
 0x4f1   : > { %1320 = vmatprep.mubr.msk.bf16.mxu1 %vm1521_vm0, %v1520_v0  ;;  %1313 = vmatpush3.bf16.msra.mxu1 %v1399_v13 }
 0x4f2   : > { %1314 = vmatprep.subr.bf16.mxu1 %v1520_v0 }
 0x4f5   : > { %1315 = vmatpush3.bf16.msra.mxu1 %v1400_v17 }
 0x4f6   : > { %1316 = vmatprep.subr.bf16.mxu1 %v1520_v0 }
 0x4f9   : > { %1317 = vmatpush3.bf16.msra.mxu1 %v1401_v29 }
 0x4fa   : > { %1318 = vmatprep.subr.bf16.mxu1 %v1520_v0 }
 0x4fd   : > { %1319 = vmatpush3.bf16.msra.mxu1 %v1402_v30 }
 0x5b0   : > { %v868_v59 = vpop.f32.mrf.mxu1 }
 0x5b1   : > { %v869_v60 = vadd.f32 %v1190_v58, %v868_v59  ;;  %v1204_v58 = vld [vmem:[#allocation4 + $0x6] ss:$0 sm:$0xff] }
 0x5b2   : > { %v1302_v61 = vpop.f32.mrf.mxu1 }
 0x5b3   : > { %v874_v62 = vadd.f32 %v869_v60, %v1659_v3  ;;  %v1398_v3 = vld [vmem:[%s1813_s2 + $0x4] ss:$8 sps:$4 sm:$0xff]   ;;  %v1205_v60 = vld [vmem:[#allocation4 + $0x7] ss:$0 sm:$0xff] }
 0x5b4   : > { %v871_v63 = vpop.f32.mrf.mxu1  ;;  %1307 = vmatpush3.bf16.msra.mxu0 %v1398_v3 }
 0x5b5   : > { %v875_v4 = vsel %vm290_vm1, %v874_v62, 0.0 }
 0x5b6   : > { %876 = vadd.xlane.f32.xlu0 %v875_v4  ;;  %v1303_v5 = vpop.f32.mrf.mxu1 }
 0x63f   : > { %v877_v6 = vpop.xlane.xlu0 %876 }
 0x640   : > { %v878_v7 = vmul.f32 0.03125, %v877_v6 }
 0x642   : > { %v879_v8 = vsub.f32 %v874_v62, %v878_v7 }
 0x644   : > { %v880_v9 = vmul.f32 %v879_v8, %v879_v8 }
 0x646   : > { %v881_v10 = vsel %vm290_vm1, %v880_v9, 0.0 }
 0x647   : > { %882 = vadd.xlane.f32.xlu1 %v881_v10 }
 0x6d0   : > { %v883_v12 = vpop.xlane.xlu1 %882 }
 0x6d1   : > { %v884_v18 = vmul.f32 0.032258064, %v883_v12 }
 0x6d3   : > { %1419 = vrsqrt.f32 %v884_v18  ;;  %vm887_vm8 = vcmp.eq.f32.partialorder %v884_v18, inf  ;;  %v890_v14 = vand.u32 2147483648, %v884_v18  ;;  %vm889_vm9 = vcmp.eq.f32.partialorder %v884_v18, 0.0 }
 0x6e0   : > { %v1420_v19 = vpop.eup %1419 }
 0x6e1   : > { %v886_v20 = vmul.f32 %v1420_v19, %v884_v18 }
 0x6e3   : > { %v888_v21 = vsel %vm887_vm8, %v884_v18, %v886_v20 }
 0x6e4   : > { %v891_v16 = vsel %vm889_vm9, %v890_v14, %v888_v21 }
 0x6e5   : > { %v892_v22 = vadd.f32 1e-06, %v891_v16 }
 0x6e7   : > { %1421 = vrcp.f32 %v892_v22 }
 0x6f4   : > { %v1422_v23 = vpop.eup %1421 }
 0x6f5   : > { %v894_v15 = vmul.f32 %v1422_v23, %v879_v8 }
 0x6f7   : > { %v899_v26 = vmul.f32 %v1192_v24, %v894_v15 }
 0x6f9   : > { %v904_v27 = vadd.f32 %v1193_v25, %v899_v26 }
 0x6fb   : > { %v905_v28 = vpack.c.bf16 %v904_v27, %v904_v27 }
 0x6fd   : > { %1309 = vmatmul.mubr.msk.bf16.vlgmr.msra.gmra.mxu0 %vm290_vm1, %v905_v28 }
 0x7bd   : > { %v959_v32 = vpop.f32.mrf.mxu0 }
 0x7be   : > { %v960_v33 = vadd.f32 %v1194_v31, %v959_v32 }
 0x7bf   : > { %v1310_v34 = vpop.f32.mrf.mxu0 }
 0x7c0   : > { %v965_v35 = vmax.f32 %v960_v33, 0.0 }
 0x7c1   : > { %v962_v36 = vpop.f32.mrf.mxu0 }
 0x7c2   : > { %v966_v37 = vpack.c.bf16 %v965_v35, %v965_v35 }
 0x7c3   : > { %v1311_v38 = vpop.f32.mrf.mxu0 }
 0x7c4   : > { %1321 = vmatmul.mubr.msk.bf16.vlgmr.msra.gmra.mxu1 %vm995_vm10, %v966_v37 }
 0x884   : > { %v1033_v40 = vpop.f32.mrf.mxu1 }
 0x885   : > { %v1034_v41 = vadd.f32 %v1198_v39, %v1033_v40 }
 0x886   : > { %v1322_v42 = vpop.f32.mrf.mxu1 }
 0x887   : > { %v1039_v0 = vadd.f32 %v1034_v41, %v904_v27 }
 0x888   : > { %v1036_v43 = vpop.f32.mrf.mxu1 }
 0x889   : > { %v1040_v44 = vsel %vm290_vm1, %v1039_v0, 0.0 }
 0x88a   : > { %1041 = vadd.xlane.f32.xlu0 %v1040_v44  ;;  %v1323_v45 = vpop.f32.mrf.mxu1 }
 0x913   : > { %v1042_v46 = vpop.xlane.xlu0 %1041 }
 0x914   : > { %v1043_v47 = vmul.f32 0.03125, %v1042_v46 }
 0x916   : > { %v1044_v48 = vsub.f32 %v1039_v0, %v1043_v47 }
 0x918   : > { %v1045_v49 = vmul.f32 %v1044_v48, %v1044_v48 }
 0x91a   : > { %v1046_v50 = vsel %vm290_vm1, %v1045_v49, 0.0 }
 0x91b   : > { %1047 = vadd.xlane.f32.xlu0 %v1046_v50 }
 0x9a4   : > { %v1048_v51 = vpop.xlane.xlu0 %1047 }
 0x9a5   : > { %v1049_v52 = vmul.f32 0.032258064, %v1048_v51 }
 0x9a7   : > { %1423 = vrsqrt.f32 %v1049_v52  ;;  %vm1052_vm11 = vcmp.eq.f32.partialorder %v1049_v52, inf  ;;  %v1055_v55 = vand.u32 2147483648, %v1049_v52  ;;  %vm1054_vm12 = vcmp.eq.f32.partialorder %v1049_v52, 0.0 }
 0x9b4   : > { %v1424_v53 = vpop.eup %1423 }
 0x9b5   : > { %v1051_v54 = vmul.f32 %v1424_v53, %v1049_v52 }
 0x9b7   : > { %v1053_v1 = vsel %vm1052_vm11, %v1049_v52, %v1051_v54 }
 0x9b8   : > { %v1056_v56 = vsel %vm1054_vm12, %v1055_v55, %v1053_v1 }
 0x9b9   : > { %v1057_v57 = vadd.f32 1e-06, %v1056_v56 }
 0x9bb   : > { %1425 = vrcp.f32 %v1057_v57 }
 0x9c8   : > { %v1426_v2 = vpop.eup %1425 }
 0x9c9   : > { %v1059_v59 = vmul.f32 %v1426_v2, %v1044_v48 }
 0x9cb   : > { %v1064_v61 = vmul.f32 %v1204_v58, %v1059_v59 }
 0x9cd   : > { %v1069_v62 = vadd.f32 %v1205_v60, %v1064_v61 }
 0x9cf   : > { %1070 = vst.msk [vmem:[%s239_s30] sm:$0xff] %vm290_vm1, %v1069_v62 }
 0x9d0   : > { %1466 = shalt.err (!%p1463_p0)
}
 0x9d1   : > { %s1467_s11 = scalar_lea.hbm %s1083_s9, 128  ;;  %s1471_s17 = scalar_lea.hbm %s1816_s5, 256 }
 0x9d2   : > { %p1468_p1 = scmp.ne.s32.totalorder %s1083_s9, %s1467_s11  ;;  %p1472_p4 = scmp.lt.s32.totalorder %s1083_s9, %s1816_s5 }
 0x9d3   : > { %p1473_p7 = scmp.lt.s32.totalorder %s1471_s17, %s1467_s11 }
 0x9d4   : > { %p1469_p2 = pnand %p1468_p1, %p1606_p5 }
 0x9d5   : > { %p1474_p8 = por %p1473_p7, %p1472_p4 }
 0x9d6   : > { %p1470_p3 = pneg %p1469_p2 }
 0x9d8   : > { %p1475_p6 = pnand %p1474_p8, %p1470_p3 }
 0x9da   : > { %1478 = shalt.err (!%p1475_p6)
}
 0x9db   : > { %1328 = dma.vmem_to_hbm [thread:$0]  (%p1606_p5), %s1086_s6, 128, %s1083_s9, %s1072_s10  }
 0x9dc PF: > { %p1340_p9 = scmp.ge.s32.totalorder %s1517_s21, 2  ;;  %s1097_s26 = sand.u32 1, %s1505_s18  }
 0x9dd   : > { %p1820_p10 = scmp.ne.s32.totalorder %s1818_s29, 0  ;;  %s1098_s30 = scalar_lea.sflag [#allocation6], %s1097_s26 }
 0x9df   : > { %p1335_p11 = pnand %p1340_p9, %p1820_p10 }
 0x9e1   : > { %p1336_p12 = pneg %p1335_p11 }
 0x9e3   : > { %1500 = dma.done.wait (%p1336_p12), %s1098_s30, 128  }
 0x9e4   : > { %1502 = vsyncadd (%p1336_p12), %s1098_s30, 4294967168  ;;  %p16_p13 = scmp.ge.s32.totalorder %s1593_s24, 4   ;;  %s1821_s18 = smov %s1509_s19 }
 0x9e5   : > { %s1822_s19 = smov %s1513_s20  ;;  %s1823_s20 = smov %s1604_s27 }
 0x9e6   : > { %s1824_s21 = smov %s1593_s24  ;;  %18 = sbr.rel (!%p16_p13) target bundleno = 4 (0x4), region = 83 }
 0x9eb   :  { %1103 = vsyncpa [#allocation5], 1 }
 0x9ec   :  { %1105 = vsyncpa [#allocation5 + $0x1], 1 }
 0x9ed   :  { %1106 = vsyncpa [#allocation6], 1 }
 0x9ee   :  { %1108 = vsyncpa [#allocation6 + $0x1], 1 }

</bundles_post_ra>
